<compile_context>
chip_gen: v5e
topology: v5e:2x2
jax: 0.10.0
libtpu: 0.0.40
codegen_flags: <defaults>
</compile_context>

<pallas_src>
import functools

import jax
import jax.numpy as jnp
from jax import lax
from jax.experimental import pallas as pl
from jax.experimental.pallas import tpu as pltpu


def _detect_loss_post_kernel(wr_ref, loss_l_ref, loss_c_ref, n_ref, out_ref, *,
                             batch):
    # All refs are tiny 1-D f32 SMEM arrays.
    #   wr_ref     : (3,)  -- cfg.LOSS.WEIGHT_RATIO (index 0 unused, as in the
    #                          original module)
    #   loss_l_ref : (B,)  -- per-sample localization partial losses
    #   loss_c_ref : (B,)  -- per-sample confidence partial losses
    #   n_ref      : (B,)  -- per-sample matched-prior counts
    #   out_ref    : (3,)  -- [loss, loss_l_scaled, loss_c_scaled]
    wr1 = wr_ref[1]
    wr2 = wr_ref[2]

    def body(i, carry):
        sl, sc, sn = carry
        return (sl + loss_l_ref[i],
                sc + loss_c_ref[i],
                sn + n_ref[i])

    zero = jnp.float32(0.0)
    sl, sc, sn = lax.fori_loop(0, batch, body, (zero, zero, zero), unroll=True)

    # Precondition (same as the PyTorch original): sum(N) != 0; otherwise the
    # result is inf/nan, exactly like the reference.
    inv = 1.0 / sn                      # one exact scalar divide
    ll = sl * wr1 * inv                 # == sum(loss_l) / (N / wr[1])
    lc = sc * wr2 * inv                 # == sum(loss_c) / (N / wr[2])

    out_ref[0] = ll + lc                # loss = (loss_l + loss_c).sum()
    out_ref[1] = ll
    out_ref[2] = lc


def detect_loss_post(loss_l, loss_c, n, weight_ratio):
    """JAX/Pallas equivalent of DetectLossPost.forward.

    loss_l, loss_c, n : 1-D arrays (per-sample / per-replica partial losses)
    weight_ratio      : length-3 array (cfg.LOSS.WEIGHT_RATIO)

    Returns (loss, (loss_l_scaled, loss_c_scaled)) as float32 scalars,
    mirroring `(loss, (loss_l.data[0], loss_c.data[0]))`.
    """
    loss_l = jnp.ravel(loss_l).astype(jnp.float32)
    loss_c = jnp.ravel(loss_c).astype(jnp.float32)
    n = jnp.ravel(n).astype(jnp.float32)
    wr = jnp.asarray(weight_ratio, dtype=jnp.float32).reshape(3)

    batch = loss_l.shape[0]

    # Tell XLA this custom call is near-zero cost so it doesn't serialize
    # neighbouring work around it.
    cost = pl.CostEstimate(
        flops=6 * batch + 8,
        transcendentals=0,
        bytes_accessed=4 * (3 * batch + 3 + 3),
    )

    out = pl.pallas_call(
        functools.partial(_detect_loss_post_kernel, batch=batch),
        out_shape=jax.ShapeDtypeStruct((3,), jnp.float32),
        in_specs=[pl.BlockSpec(memory_space=pltpu.SMEM)] * 4,
        out_specs=pl.BlockSpec(memory_space=pltpu.SMEM),
        cost_estimate=cost,
    )(wr, loss_l, loss_c, n)

    # out = [loss, loss_l_scaled, loss_c_scaled]; under jit these slices fuse
    # into the consumer.
    return out[0], (out[1], out[2])


if __name__ == "__main__":
    key = jax.random.PRNGKey(0)
    k1, k2, k3 = jax.random.split(key, 3)

    B = 8  # per-replica / per-sample partial losses
    # Deterministic config stand-in: cfg.LOSS.WEIGHT_RATIO
    weight_ratio = jnp.array([1.0, 2.0, 0.5], dtype=jnp.float32)

    loss_l = jax.random.uniform(k1, (B,), dtype=jnp.float32)
    loss_c = jax.random.uniform(k2, (B,), dtype=jnp.float32)
    # number of matched priors per sample (strictly positive counts)
    n = jax.random.uniform(k3, (B,), dtype=jnp.float32) * 10.0 + 1.0

    loss, (ll, lc) = detect_loss_post(loss_l, loss_c, n, weight_ratio)
    jax.block_until_ready((loss, ll, lc))

    # Pure-JAX reference check
    n_sum = jnp.sum(n)
    ll_ref = jnp.sum(loss_l) / (n_sum / weight_ratio[1])
    lc_ref = jnp.sum(loss_c) / (n_sum / weight_ratio[2])
    loss_ref = ll_ref + lc_ref
    assert jnp.allclose(loss, loss_ref, rtol=1e-5, atol=1e-6)
    assert jnp.allclose(ll, ll_ref, rtol=1e-5, atol=1e-6)
    assert jnp.allclose(lc, lc_ref, rtol=1e-5, atol=1e-6)

    print("KERNEL_OK")
</pallas_src>

<mosaic_0001>
module attributes {stable_mosaic.version = 11 : i64} {
  func.func @_detect_loss_post_kernel(%arg0: memref<3xf32, #tpu.memory_space<smem>>, %arg1: memref<8xf32, #tpu.memory_space<smem>>, %arg2: memref<8xf32, #tpu.memory_space<smem>>, %arg3: memref<8xf32, #tpu.memory_space<smem>>, %arg4: memref<3xf32, #tpu.memory_space<smem>>) attributes {dimension_semantics = [], scalar_prefetch = 0 : i64, scratch_operands = 0 : i64, tpu.core_type = #tpu.core_type<tc>} {
    %c1 = arith.constant 1 : index
    %0 = memref.load %arg0[%c1] : memref<3xf32, #tpu.memory_space<smem>>
    %c2 = arith.constant 2 : index
    %1 = memref.load %arg0[%c2] : memref<3xf32, #tpu.memory_space<smem>>
    %cst = arith.constant 0.000000e+00 : f32
    %cst_0 = arith.constant 0.000000e+00 : f32
    %cst_1 = arith.constant 0.000000e+00 : f32
    %c0_i32 = arith.constant 0 : i32
    %2 = arith.index_cast %c0_i32 : i32 to index
    %3 = memref.load %arg1[%2] : memref<8xf32, #tpu.memory_space<smem>>
    %4 = arith.addf %cst, %3 : f32
    %5 = arith.index_cast %c0_i32 : i32 to index
    %6 = memref.load %arg2[%5] : memref<8xf32, #tpu.memory_space<smem>>
    %7 = arith.addf %cst_0, %6 : f32
    %8 = arith.index_cast %c0_i32 : i32 to index
    %9 = memref.load %arg3[%8] : memref<8xf32, #tpu.memory_space<smem>>
    %10 = arith.addf %cst_1, %9 : f32
    %c1_i32 = arith.constant 1 : i32
    %11 = arith.index_cast %c1_i32 : i32 to index
    %12 = memref.load %arg1[%11] : memref<8xf32, #tpu.memory_space<smem>>
    %13 = arith.addf %4, %12 : f32
    %14 = arith.index_cast %c1_i32 : i32 to index
    %15 = memref.load %arg2[%14] : memref<8xf32, #tpu.memory_space<smem>>
    %16 = arith.addf %7, %15 : f32
    %17 = arith.index_cast %c1_i32 : i32 to index
    %18 = memref.load %arg3[%17] : memref<8xf32, #tpu.memory_space<smem>>
    %19 = arith.addf %10, %18 : f32
    %c2_i32 = arith.constant 2 : i32
    %20 = arith.index_cast %c2_i32 : i32 to index
    %21 = memref.load %arg1[%20] : memref<8xf32, #tpu.memory_space<smem>>
    %22 = arith.addf %13, %21 : f32
    %23 = arith.index_cast %c2_i32 : i32 to index
    %24 = memref.load %arg2[%23] : memref<8xf32, #tpu.memory_space<smem>>
    %25 = arith.addf %16, %24 : f32
    %26 = arith.index_cast %c2_i32 : i32 to index
    %27 = memref.load %arg3[%26] : memref<8xf32, #tpu.memory_space<smem>>
    %28 = arith.addf %19, %27 : f32
    %c3_i32 = arith.constant 3 : i32
    %29 = arith.index_cast %c3_i32 : i32 to index
    %30 = memref.load %arg1[%29] : memref<8xf32, #tpu.memory_space<smem>>
    %31 = arith.addf %22, %30 : f32
    %32 = arith.index_cast %c3_i32 : i32 to index
    %33 = memref.load %arg2[%32] : memref<8xf32, #tpu.memory_space<smem>>
    %34 = arith.addf %25, %33 : f32
    %35 = arith.index_cast %c3_i32 : i32 to index
    %36 = memref.load %arg3[%35] : memref<8xf32, #tpu.memory_space<smem>>
    %37 = arith.addf %28, %36 : f32
    %c4_i32 = arith.constant 4 : i32
    %38 = arith.index_cast %c4_i32 : i32 to index
    %39 = memref.load %arg1[%38] : memref<8xf32, #tpu.memory_space<smem>>
    %40 = arith.addf %31, %39 : f32
    %41 = arith.index_cast %c4_i32 : i32 to index
    %42 = memref.load %arg2[%41] : memref<8xf32, #tpu.memory_space<smem>>
    %43 = arith.addf %34, %42 : f32
    %44 = arith.index_cast %c4_i32 : i32 to index
    %45 = memref.load %arg3[%44] : memref<8xf32, #tpu.memory_space<smem>>
    %46 = arith.addf %37, %45 : f32
    %c5_i32 = arith.constant 5 : i32
    %47 = arith.index_cast %c5_i32 : i32 to index
    %48 = memref.load %arg1[%47] : memref<8xf32, #tpu.memory_space<smem>>
    %49 = arith.addf %40, %48 : f32
    %50 = arith.index_cast %c5_i32 : i32 to index
    %51 = memref.load %arg2[%50] : memref<8xf32, #tpu.memory_space<smem>>
    %52 = arith.addf %43, %51 : f32
    %53 = arith.index_cast %c5_i32 : i32 to index
    %54 = memref.load %arg3[%53] : memref<8xf32, #tpu.memory_space<smem>>
    %55 = arith.addf %46, %54 : f32
    %c6_i32 = arith.constant 6 : i32
    %56 = arith.index_cast %c6_i32 : i32 to index
    %57 = memref.load %arg1[%56] : memref<8xf32, #tpu.memory_space<smem>>
    %58 = arith.addf %49, %57 : f32
    %59 = arith.index_cast %c6_i32 : i32 to index
    %60 = memref.load %arg2[%59] : memref<8xf32, #tpu.memory_space<smem>>
    %61 = arith.addf %52, %60 : f32
    %62 = arith.index_cast %c6_i32 : i32 to index
    %63 = memref.load %arg3[%62] : memref<8xf32, #tpu.memory_space<smem>>
    %64 = arith.addf %55, %63 : f32
    %c7_i32 = arith.constant 7 : i32
    %65 = arith.index_cast %c7_i32 : i32 to index
    %66 = memref.load %arg1[%65] : memref<8xf32, #tpu.memory_space<smem>>
    %67 = arith.addf %58, %66 : f32
    %68 = arith.index_cast %c7_i32 : i32 to index
    %69 = memref.load %arg2[%68] : memref<8xf32, #tpu.memory_space<smem>>
    %70 = arith.addf %61, %69 : f32
    %71 = arith.index_cast %c7_i32 : i32 to index
    %72 = memref.load %arg3[%71] : memref<8xf32, #tpu.memory_space<smem>>
    %73 = arith.addf %64, %72 : f32
    %c8_i32 = arith.constant 8 : i32
    %cst_2 = arith.constant 1.000000e+00 : f32
    %74 = arith.divf %cst_2, %73 : f32
    %75 = arith.mulf %67, %0 : f32
    %76 = arith.mulf %75, %74 : f32
    %77 = arith.mulf %70, %1 : f32
    %78 = arith.mulf %77, %74 : f32
    %79 = arith.addf %76, %78 : f32
    %c0 = arith.constant 0 : index
    %80 = memref.load %arg4[%c0] : memref<3xf32, #tpu.memory_space<smem>>
    memref.store %79, %arg4[%c0] : memref<3xf32, #tpu.memory_space<smem>>
    %c1_3 = arith.constant 1 : index
    %81 = memref.load %arg4[%c1_3] : memref<3xf32, #tpu.memory_space<smem>>
    memref.store %76, %arg4[%c1_3] : memref<3xf32, #tpu.memory_space<smem>>
    %c2_4 = arith.constant 2 : index
    %82 = memref.load %arg4[%c2_4] : memref<3xf32, #tpu.memory_space<smem>>
    memref.store %78, %arg4[%c2_4] : memref<3xf32, #tpu.memory_space<smem>>
    return
  }
}

</mosaic_0001>

<bundles_post_ra>
// kernel: tpu_custom_call.1
= control target key start
LH: loop header
LB: loop body
LE: loop exit
PB: predicated region body
PF: predicated region fallthrough
CT: control target
= control target key end

     0   :  { %9 = vsyncpa [#allocation3], 0  ;;  %s310_s0 = inlined_call_operand.hbm [shape: f32[3], index: 0, kind: input, shape index: {}]   ;;  %s311_s1 = inlined_call_operand.hbm [shape: f32[8], index: 1, kind: input, shape index: {}]   ;;  %s312_s2 = inlined_call_operand.vmem [shape: f32[8], index: 2, kind: input, shape index: {}]   ;;  %s313_s3 = inlined_call_operand.vmem [shape: f32[8], index: 3, kind: input, shape index: {}]   ;;  %s314_s4 = inlined_call_operand.hbm [shape: f32[3], index: 4, kind: output, shape index: {}]  }
   0x1   :  { %10 = vsyncpa [#allocation7], 0 }
   0x2   :  { %11 = vsyncpa [#allocation5], 0 }
   0x3   :  { %12 = vsyncpa [#allocation10], 0 }
   0x4   :  { %13 = vsyncpa [#allocation4], 0  ;;  %s19_s17 = sshll.u32 %s310_s0, 4  ;;  %s28_s20 = sshll.u32 %s311_s1, 4  ;;  %s20_s17 = int_to_ptr.hbm [resolvable:$true] %s19_s17  ;;  %s29_s20 = int_to_ptr.hbm [resolvable:$true] %s28_s20 }
   0x5   :  { %s265_s21 = smov [#allocation2]   ;;  %s266_s22 = smov [#allocation6]  }
   0x6   :  { %22 = dma.hbm_to_smem %s20_s17, 16, %s265_s21, [#allocation3]  }
   0x7   :  { %31 = dma.hbm_to_smem %s29_s20, 16, %s266_s22, [#allocation7]  }
   0x8   :  { %s37_s25 = sshll.u32 %s312_s2, 4  ;;  %s46_s28 = sshll.u32 %s313_s3, 4  ;;  %s38_s25 = int_to_ptr.vmem [resolvable:$true] %s37_s25  ;;  %s47_s28 = int_to_ptr.vmem [resolvable:$true] %s46_s28 }
   0x9   :  { %s267_s0 = smov [#allocation8]   ;;  %s268_s29 = smov [#allocation9]  }
   0xa   :  { %40 = dma.vmem_to_smem %s38_s25, 16, %s267_s0, [#allocation5]  }
   0xb   :  { %49 = dma.vmem_to_smem %s47_s28, 16, %s268_s29, [#allocation10]  }
   0xc   :  { %255 = dma.done.wait [#allocation3], 16  }
   0xd   :  { %256 = vsyncadd [#allocation3], 4294967280 }
   0xe   :  { %257 = dma.done.wait [#allocation7], 16  }
   0xf   :  { %258 = vsyncadd [#allocation7], 4294967280 }
  0x10   :  { %259 = dma.done.wait [#allocation5], 16  }
  0x11   :  { %260 = vsyncadd [#allocation5], 4294967280 }
  0x12   :  { %261 = dma.done.wait [#allocation10], 16  }
  0x13   :  { %262 = vsyncadd [#allocation10], 4294967280 }
  0x14   :  { %66 = sfence }
  0x15   :  { %s73_s1 = sld [smem:[#allocation9]] }
  0x16   :  { %s167_s2 = sld [smem:[#allocation9 + $0x1]] }
  0x17   :  { %s170_s30 = sld [smem:[#allocation9 + $0x2]] }
  0x18   :  { %s173_s5 = sld [smem:[#allocation9 + $0x3]] }
  0x19   :  { %s176_s6 = sld [smem:[#allocation9 + $0x4]] }
  0x1a   :  { %s179_s3 = sld [smem:[#allocation9 + $0x5]] }
  0x1b   :  { %s182_s8 = sld [smem:[#allocation9 + $0x6]] }
  0x1c   :  { %s80_s7 = sadd.f32 %s167_s2, %s73_s1 }
  0x1d   :  { %s185_s10 = sld [smem:[#allocation9 + $0x7]] }
  0x1e   :  { %s86_s9 = sadd.f32 %s170_s30, %s80_s7 }
  0x1f   :  { %s69_s16 = sld [smem:[#allocation6]] }
  0x20   :  { %s92_s11 = sadd.f32 %s173_s5, %s86_s9 }
  0x21   :  { %s165_s17 = sld [smem:[#allocation6 + $0x1]] }
  0x22   :  { %s98_s12 = sadd.f32 %s176_s6, %s92_s11 }
  0x23   :  { %s71_s18 = sld [smem:[#allocation8]] }
  0x24   :  { %s104_s13 = sadd.f32 %s179_s3, %s98_s12 }
  0x25   :  { %s166_s19 = sld [smem:[#allocation8 + $0x1]] }
  0x26   :  { %s110_s14 = sadd.f32 %s182_s8, %s104_s13 }
  0x27   :  { %s168_s20 = sld [smem:[#allocation6 + $0x2]] }
  0x28   :  { %s116_s15 = sadd.f32 %s185_s10, %s110_s14 }
  0x29   :  { %s169_s21 = sld [smem:[#allocation8 + $0x2]] }
  0x2a   :  { %v117_v0 = vstv %s116_s15  ;;  %s171_s22 = sld [smem:[#allocation6 + $0x3]] }
  0x2b   :  { %193 = vrcp.f32 %v117_v0  ;;  %v129_v3 = vand.u32 2147483648, %v117_v0  ;;  %vm123_vm0 = vweird.f32 %v117_v0  ;;  %v127_v5 = vand.u32 2147483647, %v117_v0  ;;  %s76_s23 = sadd.f32 %s165_s17, %s69_s16 }
  0x2c   :  { %s172_s24 = sld [smem:[#allocation8 + $0x3]] }
  0x2d   :  { %v130_v7 = vor.u32 1.1754944e-38, %v129_v3  ;;  %vm128_vm3 = vcmp.eq.f32.partialorder %v127_v5, 8.507059e+37  ;;  %s78_s25 = sadd.f32 %s166_s19, %s71_s18 }
  0x2e   :  { %s82_s26 = sadd.f32 %s168_s20, %s76_s23  ;;  %s149_s23 = sshll.u32 %s314_s4, 4  ;;  %s150_s23 = int_to_ptr.hbm [resolvable:$true] %s149_s23 }
  0x2f   :  { %s84_s27 = sadd.f32 %s169_s21, %s78_s25 }
  0x30   :  { %s174_s28 = sld [smem:[#allocation6 + $0x4]] }
  0x31   :  { %v194_v1 = vpop.eup %193  ;;  %s175_s0 = sld [smem:[#allocation8 + $0x4]] }
  0x32   :  { %v119_v2 = vmul.f32 %v194_v1, %v117_v0  ;;  %vm124_vm1 = vweird.f32 %v194_v1  ;;  %s88_s29 = sadd.f32 %s171_s22, %s82_s26 }
  0x33   :  { %vm125_vm2 = vmor %vm123_vm0, %vm124_vm1  ;;  %s90_s1 = sadd.f32 %s172_s24, %s84_s27  ;;  %s269_s27 = smov [#allocation11]  }
  0x34   :  { %v120_v4 = vsub.f32 1.0, %v119_v2  ;;  %s177_s2 = sld [smem:[#allocation6 + $0x5]] }
  0x35   :  { %s178_s30 = sld [smem:[#allocation8 + $0x5]] }
  0x36   :  { %v121_v6 = vmul.f32 %v194_v1, %v120_v4  ;;  %s94_s5 = sadd.f32 %s174_s28, %s88_s29 }
  0x37   :  { %s96_s6 = sadd.f32 %s175_s0, %s90_s1 }
  0x38   :  { %v122_v8 = vadd.f32 %v194_v1, %v121_v6  ;;  %s180_s3 = sld [smem:[#allocation6 + $0x6]] }
  0x39   :  { %s181_s7 = sld [smem:[#allocation8 + $0x6]] }
  0x3a   :  { %v126_v9 = vsel %vm125_vm2, %v194_v1, %v122_v8  ;;  %s100_s8 = sadd.f32 %s177_s2, %s94_s5 }
  0x3b   :  { %v131_v10 = vsel %vm128_vm3, %v130_v7, %v126_v9  ;;  %s102_s9 = sadd.f32 %s178_s30, %s96_s6 }
  0x3c   :  { %186 = vpush %v131_v10  ;;  %s183_s10 = sld [smem:[#allocation6 + $0x7]] }
  0x3d   :  { %s184_s11 = sld [smem:[#allocation8 + $0x7]] }
  0x3e   :  { %s163_s12 = sld [smem:[#allocation2 + $0x1]] }
  0x3f   :  { %s164_s13 = sld [smem:[#allocation2 + $0x2]] }
  0x40   :  { %s106_s14 = sadd.f32 %s180_s3, %s100_s8 }
  0x41   :  { %s108_s15 = sadd.f32 %s181_s7, %s102_s9 }
  0x42   :  { %s112_s16 = sadd.f32 %s183_s10, %s106_s14 }
  0x43   :  { %s114_s17 = sadd.f32 %s184_s11, %s108_s15 }
  0x44   :  { %s133_s18 = smul.f32 %s163_s12, %s112_s16 }
  0x45   :  { %s135_s19 = smul.f32 %s164_s13, %s114_s17 }
  0x6d   :  { %s187_s20 = spop %186 }
  0x6e   :  { %s134_s24 = smul.f32 %s187_s20, %s133_s18 }
  0x6f   :  { %s136_s25 = smul.f32 %s187_s20, %s135_s19 }
  0x70   :  { %141 = sst [smem:[#allocation11 + $0x1]] %s134_s24 }
  0x71   :  { %s137_s26 = sadd.f32 %s136_s25, %s134_s24 }
  0x72   :  { %143 = sst [smem:[#allocation11 + $0x2]] %s136_s25 }
  0x73   :  { %139 = sst [smem:[#allocation11]] %s137_s26 }
  0x74   :  { %152 = dma.smem_to_hbm %s269_s27, 16, %s150_s23, [#allocation4]  }
  0x75   :  { %263 = dma.done.wait [#allocation4], 16  }
  0x76   :  { %264 = vsyncadd [#allocation4], 4294967280 }
  0x77   :  { %157 = sfence }
  0x78   :  { %158 = vsyncpa [#allocation3], 1 }
  0x79   :  { %159 = vsyncpa [#allocation7], 1 }
  0x7a   :  { %160 = vsyncpa [#allocation4], 1 }
  0x7b   :  { %161 = vsyncpa [#allocation5], 1 }
  0x7c   :  { %162 = vsyncpa [#allocation10], 1 }

</bundles_post_ra>
